<compile_context>
chip_gen: v7x
topology: tpu7x:2x2x1
jax: 0.10.0
libtpu: 0.0.40
codegen_flags: <defaults>
</compile_context>

<pallas_src>
import math
from functools import partial

import jax
import jax.numpy as jnp
from jax.experimental import pallas as pl
from jax.experimental.pallas import tpu as pltpu

EPS = 1e-5  # torch BatchNorm2d default eps


# ----------------------------------------------------------------------------
# Pallas kernel
# ----------------------------------------------------------------------------
def _bn_train(y, gamma, beta):
    """torch BatchNorm2d *training-mode* forward in (C, M) layout.

    Single-pass statistics: biased variance via E[y^2]-E[y]^2 over the M
    (lane) axis, clamped to >=0 to guard against cancellation."""
    mu = jnp.mean(y, axis=1, keepdims=True)
    msq = jnp.mean(y * y, axis=1, keepdims=True)
    var = jnp.maximum(msq - mu * mu, 0.0)
    return gamma * (y - mu) * jax.lax.rsqrt(var + EPS) + beta


def attention_block_kernel(g_ref, x_ref, w_ref, pslab_ref, psi_ab_ref, o_ref,
                           *, n_batch, f_g, f_l, f_int, hw):
    """Fused AttentionBlock forward.

    Layouts (M = n_batch * hw):
      g_ref:     (n_batch*f_g, hw) f32   -- free reshape of NCHW g
      x_ref:     (n_batch*f_l, hw) f32   -- free reshape of NCHW x
      w_ref:     (2*f_int, f_g+f_l) bf16 -- blockdiag(W_g, W_x)
      pslab_ref: (2*f_int, 3) f32        -- [gamma | beta | psi-weight(pad)]
      psi_ab_ref:(2,) f32 in SMEM        -- [gamma_psi, beta_psi]
      o_ref:     (n_batch*f_l, hw) f32   -- free reshape of NCHW output
    """
    # --- Pack activations into one lane-dense (f_g+f_l, M) bf16 slab -------
    # Lanes [n*hw, (n+1)*hw) hold batch n; rows 0..f_g-1 = g, f_g.. = x.
    # Static slices / concatenations on (8,128)-aligned boundaries -> cheap
    # VMEM copies (~tens of vregs at these shapes).
    g_cols = jnp.concatenate(
        [g_ref[n * f_g:(n + 1) * f_g, :].astype(jnp.bfloat16)
         for n in range(n_batch)], axis=1)                      # (f_g, M)
    x_cols = jnp.concatenate(
        [x_ref[n * f_l:(n + 1) * f_l, :].astype(jnp.bfloat16)
         for n in range(n_batch)], axis=1)                      # (f_l, M)
    gx = jnp.concatenate([g_cols, x_cols], axis=0)              # (f_g+f_l, M)

    # --- ONE block-diagonal MXU matmul (both 1x1-conv branches) ------------
    # Rows 0..f_int-1 are the W_g branch, rows f_int.. are the W_x branch.
    # bf16 operands, f32 accumulation.  Conv biases omitted: train-mode BN
    # mean subtraction cancels a per-channel constant exactly.
    y = jnp.dot(w_ref[...], gx,
                preferred_element_type=jnp.float32)             # (2*f_int, M)

    # --- ONE BatchNorm pass over the stacked tile --------------------------
    gamma = pslab_ref[:, 0:1]                                   # (2*f_int, 1)
    beta = pslab_ref[:, 1:2]
    y = _bn_train(y, gamma, beta)

    s = y[:f_int, :] + y[f_int:, :]                             # (f_int, M)

    # --- psi: 1x1 conv down to a single channel -----------------------------
    # VPU multiply + sublane reduction (an MXU matmul with one output row
    # would light up <1% of the systolic array).
    wp = pslab_ref[:f_int, 2:3]                                 # (f_int, 1)
    psi = jnp.sum(s * wp, axis=0, keepdims=True)                # (1, M)
    psi = _bn_train(psi, psi_ab_ref[0], psi_ab_ref[1])
    psi = jax.nn.sigmoid(psi)                                   # EUP slot

    # --- Gate, written straight back in (n, c, hw) order --------------------
    # x is re-sliced from VMEM here (not held live across the BN phase).
    for n in range(n_batch):
        o_ref[n * f_l:(n + 1) * f_l, :] = (
            x_ref[n * f_l:(n + 1) * f_l, :] * psi[:, n * hw:(n + 1) * hw])


# ----------------------------------------------------------------------------
# Wrapper — only free reshapes + tiny parameter packing (no transposes).
# ----------------------------------------------------------------------------
def attention_block(g_nchw, x_nchw, p):
    N, F_g, H, W = g_nchw.shape
    _, F_l, _, _ = x_nchw.shape
    HW = H * W
    F_int = p["wg"].shape[0]

    # Row-major collapses: no data movement.
    g2 = g_nchw.reshape(N * F_g, HW)
    x2 = x_nchw.reshape(N * F_l, HW)

    # Block-diagonal fused weight (2*F_int, F_g+F_l), bf16.
    wcat = jnp.zeros((2 * F_int, F_g + F_l), jnp.float32)
    wcat = wcat.at[:F_int, :F_g].set(p["wg"].astype(jnp.float32))
    wcat = wcat.at[F_int:, F_g:].set(p["wx"].astype(jnp.float32))
    wcat = wcat.astype(jnp.bfloat16)

    # Packed per-channel parameter slab: [gamma | beta | psi-weight(padded)].
    pslab = jnp.zeros((2 * F_int, 3), jnp.float32)
    pslab = pslab.at[:F_int, 0].set(p["gam_g"][:, 0])
    pslab = pslab.at[F_int:, 0].set(p["gam_x"][:, 0])
    pslab = pslab.at[:F_int, 1].set(p["bet_g"][:, 0])
    pslab = pslab.at[F_int:, 1].set(p["bet_x"][:, 0])
    pslab = pslab.at[:F_int, 2].set(p["wp"][:, 0])

    # psi BN affine scalars -> SMEM.
    psi_ab = jnp.stack([p["gam_p"][0, 0], p["bet_p"][0, 0]])

    kernel = partial(attention_block_kernel,
                     n_batch=N, f_g=F_g, f_l=F_l, f_int=F_int, hw=HW)

    out2 = pl.pallas_call(
        kernel,
        out_shape=jax.ShapeDtypeStruct((N * F_l, HW), jnp.float32),
        in_specs=[
            pl.BlockSpec(memory_space=pltpu.MemorySpace.VMEM),   # g
            pl.BlockSpec(memory_space=pltpu.MemorySpace.VMEM),   # x
            pl.BlockSpec(memory_space=pltpu.MemorySpace.VMEM),   # blockdiag W
            pl.BlockSpec(memory_space=pltpu.MemorySpace.VMEM),   # param slab
            pl.BlockSpec(memory_space=pltpu.MemorySpace.SMEM),   # psi BN affine
        ],
        out_specs=pl.BlockSpec(memory_space=pltpu.MemorySpace.VMEM),
    )(g2, x2, wcat, pslab, psi_ab)

    return out2.reshape(N, F_l, H, W)                            # free reshape


# ----------------------------------------------------------------------------
# Deterministic synthetic parameters (fresh-module style; BN affine params are
# perturbed from torch's 1/0 defaults so the self-check is non-degenerate).
# ----------------------------------------------------------------------------
def init_attention_params(key, f_g, f_l, f_int):
    ks = jax.random.split(key, 12)
    p = {}
    p["wg"] = (jax.random.normal(ks[0], (f_int, f_g), jnp.float32)
               / math.sqrt(f_g)).astype(jnp.bfloat16)
    p["bg"] = 0.1 * jax.random.normal(ks[1], (f_int,), jnp.float32)
    p["wx"] = (jax.random.normal(ks[2], (f_int, f_l), jnp.float32)
               / math.sqrt(f_l)).astype(jnp.bfloat16)
    p["bx"] = 0.1 * jax.random.normal(ks[3], (f_int,), jnp.float32)
    p["wp"] = jax.random.normal(ks[4], (f_int, 1), jnp.float32) / math.sqrt(f_int)
    p["bp"] = 0.1 * jax.random.normal(ks[5], (1,), jnp.float32)
    p["gam_g"] = 1.0 + 0.1 * jax.random.normal(ks[6], (f_int, 1), jnp.float32)
    p["bet_g"] = 0.1 * jax.random.normal(ks[7], (f_int, 1), jnp.float32)
    p["gam_x"] = 1.0 + 0.1 * jax.random.normal(ks[8], (f_int, 1), jnp.float32)
    p["bet_x"] = 0.1 * jax.random.normal(ks[9], (f_int, 1), jnp.float32)
    p["gam_p"] = 1.0 + 0.1 * jax.random.normal(ks[10], (1, 1), jnp.float32)
    p["bet_p"] = 0.1 * jax.random.normal(ks[11], (1, 1), jnp.float32)
    return p


# ----------------------------------------------------------------------------
# Pure-JAX torch-semantics reference (f32, HIGHEST matmul precision, WITH the
# conv biases that the kernel omits — train-mode BN cancels them exactly).
# ----------------------------------------------------------------------------
def _bn2d_train_ref(y, gamma, beta):
    mu = jnp.mean(y, axis=(0, 2, 3), keepdims=True)
    var = jnp.mean(jnp.square(y - mu), axis=(0, 2, 3), keepdims=True)
    yhat = (y - mu) * jax.lax.rsqrt(var + EPS)
    return gamma[None, :, None, None] * yhat + beta[None, :, None, None]


def attention_block_reference(g, x, p):
    hi = jax.lax.Precision.HIGHEST
    wg = p["wg"].astype(jnp.float32)
    wx = p["wx"].astype(jnp.float32)
    g1 = jnp.einsum("oc,nchw->nohw", wg, g, precision=hi) \
        + p["bg"][None, :, None, None]
    g1 = _bn2d_train_ref(g1, p["gam_g"][:, 0], p["bet_g"][:, 0])
    x1 = jnp.einsum("oc,nchw->nohw", wx, x, precision=hi) \
        + p["bx"][None, :, None, None]
    x1 = _bn2d_train_ref(x1, p["gam_x"][:, 0], p["bet_x"][:, 0])
    s = g1 + x1
    psi = jnp.einsum("co,nchw->nohw", p["wp"], s, precision=hi) \
        + p["bp"][None, :, None, None]
    psi = _bn2d_train_ref(psi, p["gam_p"][:, 0], p["bet_p"][:, 0])
    psi = jax.nn.sigmoid(psi)
    return x * psi


# ----------------------------------------------------------------------------
if __name__ == "__main__":
    N, F_g, F_l, F_int, H, W = 2, 32, 32, 16, 16, 16   # M = N*H*W = 512

    kg, kx = jax.random.split(jax.random.PRNGKey(0))
    g = jax.random.normal(kg, (N, F_g, H, W), jnp.float32)
    x = jax.random.normal(kx, (N, F_l, H, W), jnp.float32)
    params = init_attention_params(jax.random.PRNGKey(42), F_g, F_l, F_int)

    out = jax.jit(attention_block)(g, x, params)
    out = jax.block_until_ready(out)

    assert out.shape == (N, F_l, H, W), out.shape
    assert bool(jnp.all(jnp.isfinite(out)))
    # psi is in (0, 1): the gated output can never exceed |x| (tiny slack
    # for rounding in the final multiply).
    assert bool(jnp.all(jnp.abs(out) <= jnp.abs(x) * (1.0 + 1e-6) + 1e-6))

    # Semantics check vs. the torch-style f32 reference.  Tolerance is sized
    # for the intentional bf16 rounding of the MXU matmul operands (bf16
    # operands + f32 accumulation): observed error is O(1e-2) absolute on
    # O(1) outputs; BN renormalisation and sigmoid's 1/4 Lipschitz constant
    # keep it well inside 5e-2.
    ref = attention_block_reference(g, x, params)
    assert bool(jnp.max(jnp.abs(out - ref)) < 5e-2)

    print("KERNEL_OK")
</pallas_src>

<mosaic_0001>
module attributes {stable_mosaic.version = 11 : i64} {
  func.func @attention_block_kernel(%arg0: memref<64x256xf32, #tpu.memory_space<vmem>>, %arg1: memref<64x256xf32, #tpu.memory_space<vmem>>, %arg2: memref<32x64xbf16, #tpu.memory_space<vmem>>, %arg3: memref<32x3xf32, #tpu.memory_space<vmem>>, %arg4: memref<2xf32, #tpu.memory_space<smem>>, %arg5: memref<64x256xf32, #tpu.memory_space<vmem>>) attributes {dimension_semantics = [], scalar_prefetch = 0 : i64, scratch_operands = 0 : i64, tpu.core_type = #tpu.core_type<tc>} {
    %c0 = arith.constant 0 : index
    %c0_0 = arith.constant 0 : index
    %0 = vector.load %arg0[%c0, %c0_0] : memref<64x256xf32, #tpu.memory_space<vmem>>, vector<32x256xf32>
    %1 = arith.truncf %0 : vector<32x256xf32> to vector<32x256xbf16>
    %c32 = arith.constant 32 : index
    %c0_1 = arith.constant 0 : index
    %2 = vector.load %arg0[%c32, %c0_1] : memref<64x256xf32, #tpu.memory_space<vmem>>, vector<32x256xf32>
    %3 = arith.truncf %2 : vector<32x256xf32> to vector<32x256xbf16>
    %4 = tpu.concatenate %1, %3 in 1 : vector<32x256xbf16>, vector<32x256xbf16> -> vector<32x512xbf16>
    %c0_2 = arith.constant 0 : index
    %c0_3 = arith.constant 0 : index
    %5 = vector.load %arg1[%c0_2, %c0_3] : memref<64x256xf32, #tpu.memory_space<vmem>>, vector<32x256xf32>
    %6 = arith.truncf %5 : vector<32x256xf32> to vector<32x256xbf16>
    %c32_4 = arith.constant 32 : index
    %c0_5 = arith.constant 0 : index
    %7 = vector.load %arg1[%c32_4, %c0_5] : memref<64x256xf32, #tpu.memory_space<vmem>>, vector<32x256xf32>
    %8 = arith.truncf %7 : vector<32x256xf32> to vector<32x256xbf16>
    %9 = tpu.concatenate %6, %8 in 1 : vector<32x256xbf16>, vector<32x256xbf16> -> vector<32x512xbf16>
    %10 = tpu.concatenate %4, %9 in 0 : vector<32x512xbf16>, vector<32x512xbf16> -> vector<64x512xbf16>
    %c0_6 = arith.constant 0 : index
    %c0_7 = arith.constant 0 : index
    %11 = vector.load %arg2[%c0_6, %c0_7] : memref<32x64xbf16, #tpu.memory_space<vmem>>, vector<32x64xbf16>
    %cst = arith.constant dense<0.000000e+00> : vector<32x512xf32>
    %12 = tpu.matmul %11, %10, %cst {dimension_numbers = #tpu.dot_dimension_numbers<[1], [0], [0], [1], [0, 0, 1, 1], [], []>} : vector<32x64xbf16>, vector<64x512xbf16>, vector<32x512xf32> -> vector<32x512xf32>
    %c0_8 = arith.constant 0 : index
    %c0_9 = arith.constant 0 : index
    %13 = vector.load %arg3[%c0_8, %c0_9] : memref<32x3xf32, #tpu.memory_space<vmem>>, vector<32x1xf32>
    %c0_10 = arith.constant 0 : index
    %c1 = arith.constant 1 : index
    %14 = vector.load %arg3[%c0_10, %c1] : memref<32x3xf32, #tpu.memory_space<vmem>>, vector<32x1xf32>
    %cst_11 = arith.constant dense<0.000000e+00> : vector<32xf32>
    %15 = vector.multi_reduction <add>, %12, %cst_11 [1] : vector<32x512xf32> to vector<32xf32>
    %16 = vector.shape_cast %15 : vector<32xf32> to vector<32x1xf32>
    %cst_12 = arith.constant 5.120000e+02 : f32
    %17 = vector.broadcast %cst_12 : f32 to vector<32x1xf32>
    %18 = arith.divf %16, %17 : vector<32x1xf32>
    %19 = arith.mulf %12, %12 : vector<32x512xf32>
    %cst_13 = arith.constant dense<0.000000e+00> : vector<32xf32>
    %20 = vector.multi_reduction <add>, %19, %cst_13 [1] : vector<32x512xf32> to vector<32xf32>
    %21 = vector.shape_cast %20 : vector<32xf32> to vector<32x1xf32>
    %cst_14 = arith.constant 5.120000e+02 : f32
    %22 = vector.broadcast %cst_14 : f32 to vector<32x1xf32>
    %23 = arith.divf %21, %22 : vector<32x1xf32>
    %24 = arith.mulf %18, %18 : vector<32x1xf32>
    %25 = arith.subf %23, %24 : vector<32x1xf32>
    %cst_15 = arith.constant 0.000000e+00 : f32
    %26 = vector.broadcast %cst_15 : f32 to vector<32x1xf32>
    %27 = arith.maximumf %25, %26 : vector<32x1xf32>
    %28 = vector.broadcast %18 : vector<32x1xf32> to vector<32x512xf32>
    %29 = arith.subf %12, %28 : vector<32x512xf32>
    %30 = vector.broadcast %13 : vector<32x1xf32> to vector<32x512xf32>
    %31 = arith.mulf %30, %29 : vector<32x512xf32>
    %cst_16 = arith.constant 9.99999974E-6 : f32
    %32 = vector.broadcast %cst_16 : f32 to vector<32x1xf32>
    %33 = arith.addf %27, %32 : vector<32x1xf32>
    %34 = math.rsqrt %33 : vector<32x1xf32>
    %35 = vector.broadcast %34 : vector<32x1xf32> to vector<32x512xf32>
    %36 = arith.mulf %31, %35 : vector<32x512xf32>
    %37 = vector.broadcast %14 : vector<32x1xf32> to vector<32x512xf32>
    %38 = arith.addf %36, %37 : vector<32x512xf32>
    %39 = vector.extract_strided_slice %38 {offsets = [0, 0], sizes = [16, 512], strides = [1, 1]} : vector<32x512xf32> to vector<16x512xf32>
    %40 = vector.extract_strided_slice %38 {offsets = [16, 0], sizes = [16, 512], strides = [1, 1]} : vector<32x512xf32> to vector<16x512xf32>
    %41 = arith.addf %39, %40 : vector<16x512xf32>
    %c0_17 = arith.constant 0 : index
    %c2 = arith.constant 2 : index
    %42 = vector.load %arg3[%c0_17, %c2] : memref<32x3xf32, #tpu.memory_space<vmem>>, vector<16x1xf32>
    %43 = vector.broadcast %42 : vector<16x1xf32> to vector<16x512xf32>
    %44 = arith.mulf %41, %43 : vector<16x512xf32>
    %cst_18 = arith.constant dense<0.000000e+00> : vector<512xf32>
    %45 = vector.multi_reduction <add>, %44, %cst_18 [0] : vector<16x512xf32> to vector<512xf32>
    %46 = vector.shape_cast %45 : vector<512xf32> to vector<1x512xf32>
    %c0_19 = arith.constant 0 : index
    %47 = memref.load %arg4[%c0_19] : memref<2xf32, #tpu.memory_space<smem>>
    %c1_20 = arith.constant 1 : index
    %48 = memref.load %arg4[%c1_20] : memref<2xf32, #tpu.memory_space<smem>>
    %cst_21 = arith.constant dense<0.000000e+00> : vector<1xf32>
    %49 = vector.multi_reduction <add>, %46, %cst_21 [1] : vector<1x512xf32> to vector<1xf32>
    %50 = vector.shape_cast %49 : vector<1xf32> to vector<1x1xf32>
    %cst_22 = arith.constant 5.120000e+02 : f32
    %51 = vector.broadcast %cst_22 : f32 to vector<1x1xf32>
    %52 = arith.divf %50, %51 : vector<1x1xf32>
    %53 = arith.mulf %46, %46 : vector<1x512xf32>
    %cst_23 = arith.constant dense<0.000000e+00> : vector<1xf32>
    %54 = vector.multi_reduction <add>, %53, %cst_23 [1] : vector<1x512xf32> to vector<1xf32>
    %55 = vector.shape_cast %54 : vector<1xf32> to vector<1x1xf32>
    %cst_24 = arith.constant 5.120000e+02 : f32
    %56 = vector.broadcast %cst_24 : f32 to vector<1x1xf32>
    %57 = arith.divf %55, %56 : vector<1x1xf32>
    %58 = arith.mulf %52, %52 : vector<1x1xf32>
    %59 = arith.subf %57, %58 : vector<1x1xf32>
    %cst_25 = arith.constant 0.000000e+00 : f32
    %60 = vector.broadcast %cst_25 : f32 to vector<1x1xf32>
    %61 = arith.maximumf %59, %60 : vector<1x1xf32>
    %62 = vector.broadcast %52 : vector<1x1xf32> to vector<1x512xf32>
    %63 = arith.subf %46, %62 : vector<1x512xf32>
    %64 = vector.broadcast %47 : f32 to vector<1x512xf32>
    %65 = arith.mulf %64, %63 : vector<1x512xf32>
    %cst_26 = arith.constant 9.99999974E-6 : f32
    %66 = vector.broadcast %cst_26 : f32 to vector<1x1xf32>
    %67 = arith.addf %61, %66 : vector<1x1xf32>
    %68 = math.rsqrt %67 : vector<1x1xf32>
    %69 = vector.broadcast %68 : vector<1x1xf32> to vector<1x512xf32>
    %70 = arith.mulf %65, %69 : vector<1x512xf32>
    %71 = vector.broadcast %48 : f32 to vector<1x512xf32>
    %72 = arith.addf %70, %71 : vector<1x512xf32>
    %73 = arith.negf %72 : vector<1x512xf32>
    %74 = math.exp %73 : vector<1x512xf32>
    %cst_27 = arith.constant 1.000000e+00 : f32
    %75 = vector.broadcast %cst_27 : f32 to vector<1x512xf32>
    %76 = arith.addf %75, %74 : vector<1x512xf32>
    %77 = arith.divf %75, %76 : vector<1x512xf32>
    %c0_28 = arith.constant 0 : index
    %c0_29 = arith.constant 0 : index
    %78 = vector.load %arg1[%c0_28, %c0_29] : memref<64x256xf32, #tpu.memory_space<vmem>>, vector<32x256xf32>
    %79 = vector.extract_strided_slice %77 {offsets = [0, 0], sizes = [1, 256], strides = [1, 1]} : vector<1x512xf32> to vector<1x256xf32>
    %80 = vector.broadcast %79 : vector<1x256xf32> to vector<32x256xf32>
    %81 = arith.mulf %78, %80 : vector<32x256xf32>
    %c0_30 = arith.constant 0 : index
    %c0_31 = arith.constant 0 : index
    %82 = vector.load %arg5[%c0_30, %c0_31] : memref<64x256xf32, #tpu.memory_space<vmem>>, vector<32x256xf32>
    tpu.vector_store %arg5[%c0_30, %c0_31], %81 {strides = array<i32>} : memref<64x256xf32, #tpu.memory_space<vmem>>, vector<32x256xf32>,
    %c32_32 = arith.constant 32 : index
    %c0_33 = arith.constant 0 : index
    %83 = vector.load %arg1[%c32_32, %c0_33] : memref<64x256xf32, #tpu.memory_space<vmem>>, vector<32x256xf32>
    %84 = vector.extract_strided_slice %77 {offsets = [0, 256], sizes = [1, 256], strides = [1, 1]} : vector<1x512xf32> to vector<1x256xf32>
    %85 = vector.broadcast %84 : vector<1x256xf32> to vector<32x256xf32>
    %86 = arith.mulf %83, %85 : vector<32x256xf32>
    %c32_34 = arith.constant 32 : index
    %c0_35 = arith.constant 0 : index
    %87 = vector.load %arg5[%c32_34, %c0_35] : memref<64x256xf32, #tpu.memory_space<vmem>>, vector<32x256xf32>
    tpu.vector_store %arg5[%c32_34, %c0_35], %86 {strides = array<i32>} : memref<64x256xf32, #tpu.memory_space<vmem>>, vector<32x256xf32>,
    return
  }
}

</mosaic_0001>

<bundles_post_ra>
// kernel: attention_block.1
= control target key start
LH: loop header
LB: loop body
LE: loop exit
PB: predicated region body
PF: predicated region fallthrough
CT: control target
= control target key end

     0   :  { %10 = vsyncpa [#allocation3], 0  ;;  %s1015_s0 = inlined_call_operand.vmem [shape: f32[64,256], index: 0, kind: input, shape index: {}]   ;;  %s1016_s1 = inlined_call_operand.vmem [shape: f32[64,256], index: 1, kind: input, shape index: {}]   ;;  %s1017_s2 = inlined_call_operand.vmem [shape: bf16[32,64], index: 2, kind: input, shape index: {}]   ;;  %s1018_s3 = inlined_call_operand.vmem [shape: f32[32,3], index: 3, kind: input, shape index: {}]   ;;  %s1019_s4 = inlined_call_operand.vmem [shape: f32[2], index: 4, kind: input, shape index: {}]   ;;  %s1020_s5 = inlined_call_operand.vmem [shape: f32[64,256], index: 5, kind: output, shape index: {}]  }
   0x1   :  { %s25_s20 = sshll.u32 %s1019_s4, 4  ;;  %s26_s20 = int_to_ptr.vmem [resolvable:$true] %s25_s20 }
   0x2   :  { %s612_s21 = scalar_lea.vmem %s26_s20, 16  ;;  %p617_p1 = scmp.lt.s32.totalorder %s26_s20, %s26_s20 }
   0x3   :  { %p613_p0 = scmp.ne.s32.totalorder %s26_s20, %s612_s21  ;;  %p618_p2 = scmp.lt.s32.totalorder %s612_s21, %s612_s21 }
   0x5   :  { %p619_p3 = por %p618_p2, %p617_p1 }
   0x7   :  { %p620_p4 = pnand %p619_p3, %p613_p0 }
   0x9   :  { %623 = shalt.err (!%p620_p4)
}
   0xa   :  { %s626_s22 = smov [#allocation2]  }
   0xb   :  { %28 = dma.vmem_to_smem %s26_s20, 16, %s626_s22, [#allocation3]  }
   0xc   :  { %624 = dma.done.wait [#allocation3], 16  }
   0xd   :  { %625 = vsyncadd [#allocation3], 4294967280 }
   0xe   :  { %32 = sfence }
   0xf   :  { %v35_v0 = vld [vmem:[%s1015_s0 + $0x8] sm:$0xff]  ;;  %v37_v1 = vld [vmem:[%s1015_s0 + $0x18] sm:$0xff]  ;;  %v34_v5 = vld [vmem:[%s1015_s0] sm:$0xff]  ;;  %v627_v7 = vmov 0   ;;  %vm96_vm0 = vcmask 523264   ;;  %s570_s17 = sld [smem:[#allocation2 + $0x1]] }
  0x10   :  { %v47_v2 = vld [vmem:[%s1015_s0 + $0x48] sm:$0xff]  ;;  %v43_v3 = vpack.c.bf16 %v37_v1, %v35_v0  ;;  %v49_v4 = vld [vmem:[%s1015_s0 + $0x58] sm:$0xff]  ;;  %v36_v6 = vld [vmem:[%s1015_s0 + $0x10] sm:$0xff]  ;;  %135 = vmatprep.mubr.bf16.mxu0 %v627_v7  ;;  %188 = vmatprep.mubr.bf16.mxu1 %v627_v7 }
  0x11   :  { %v55_v8 = vpack.c.bf16 %v49_v4, %v47_v2  ;;  %v42_v9 = vpack.c.bf16 %v36_v6, %v34_v5  ;;  %v46_v10 = vld [vmem:[%s1015_s0 + $0x40] sm:$0xff]  ;;  %v48_v11 = vld [vmem:[%s1015_s0 + $0x50] sm:$0xff]  ;;  %v39_v12 = vld [vmem:[%s1015_s0 + $0x28] sm:$0xff]  ;;  %580 = vset.pattern.permute.xlu1 %v627_v7  ;;  %579 = vset.pattern.permute.xlu0 %v627_v7 }
  0x12   :  { %103 = vmatprep.subr.bf16.mxu0 %v43_v3  ;;  %v54_v13 = vpack.c.bf16 %v48_v11, %v46_v10  ;;  %v41_v14 = vld [vmem:[%s1015_s0 + $0x38] sm:$0xff]  ;;  %v51_v15 = vld [vmem:[%s1015_s0 + $0x68] sm:$0xff]  ;;  %v38_v19 = vld [vmem:[%s1015_s0 + $0x20] sm:$0xff] }
  0x13   :  { %v53_v16 = vld [vmem:[%s1015_s0 + $0x78] sm:$0xff]  ;;  %156 = vmatprep.subr.bf16.mxu1 %v55_v8  ;;  %104 = vmatpush1.bf16.msra.mxu0 %v42_v9  ;;  %v45_v17 = vpack.c.bf16 %v41_v14, %v39_v12  ;;  %v40_v20 = vld [vmem:[%s1015_s0 + $0x30] sm:$0xff]  ;;  %v50_v21 = vld [vmem:[%s1015_s0 + $0x60] sm:$0xff] }
  0x14   :  { %v57_v18 = vpack.c.bf16 %v53_v16, %v51_v15  ;;  %157 = vmatpush1.bf16.msra.mxu1 %v54_v13  ;;  %v44_v22 = vpack.c.bf16 %v40_v20, %v38_v19  ;;  %v52_v23 = vld [vmem:[%s1015_s0 + $0x70] sm:$0xff]  ;;  %v718_v24 = vld [vmem:[%s1016_s1 + $0x8] sm:$0xff]  ;;  %v723_v25 = vld [vmem:[%s1016_s1 + $0x18] sm:$0xff] }
  0x15   :  { %105 = vmatprep.subr.bf16.mxu0 %v45_v17  ;;  %v56_v26 = vpack.c.bf16 %v52_v23, %v50_v21  ;;  %v67_v27 = vpack.c.bf16 %v723_v25, %v718_v24  ;;  %v730_v28 = vld [vmem:[%s1016_s1 + $0x48] sm:$0xff]  ;;  %v735_v29 = vld [vmem:[%s1016_s1 + $0x58] sm:$0xff]  ;;  %v740_v30 = vld [vmem:[%s1016_s1] sm:$0xff] }
  0x16   :  { %158 = vmatprep.subr.bf16.mxu1 %v57_v18  ;;  %v79_v31 = vpack.c.bf16 %v735_v29, %v730_v28  ;;  %v747_v32 = vld [vmem:[%s1016_s1 + $0x10] sm:$0xff]  ;;  %v752_v33 = vld [vmem:[%s1016_s1 + $0x40] sm:$0xff]  ;;  %v764_v36 = vld [vmem:[%s1016_s1 + $0x28] sm:$0xff] }
  0x17   :  { %v757_v34 = vld [vmem:[%s1016_s1 + $0x50] sm:$0xff]  ;;  %106 = vmatpush1.bf16.msra.mxu0 %v44_v22  ;;  %v66_v35 = vpack.c.bf16 %v747_v32, %v740_v30  ;;  %v769_v37 = vld [vmem:[%s1016_s1 + $0x38] sm:$0xff]  ;;  %v774_v38 = vld [vmem:[%s1016_s1 + $0x68] sm:$0xff] }
  0x18   :  { %159 = vmatpush1.bf16.msra.mxu1 %v56_v26  ;;  %107 = vmatprep.subr.bf16.mxu0 %v67_v27  ;;  %v78_v39 = vpack.c.bf16 %v757_v34, %v752_v33  ;;  %v69_v40 = vpack.c.bf16 %v769_v37, %v764_v36  ;;  %v783_v41 = vld [vmem:[%s1016_s1 + $0x78] sm:$0xff]  ;;  %v788_v42 = vld [vmem:[%s1016_s1 + $0x20] sm:$0xff]  ;;  %v793_v43 = vld [vmem:[%s1016_s1 + $0x30] sm:$0xff] }
  0x19   :  { %160 = vmatprep.subr.bf16.mxu1 %v79_v31  ;;  %v81_v44 = vpack.c.bf16 %v783_v41, %v774_v38  ;;  %v800_v45 = vld [vmem:[%s1016_s1 + $0x60] sm:$0xff]  ;;  %v805_v46 = vld [vmem:[%s1016_s1 + $0x70] sm:$0xff]  ;;  %v68_v47 = vpack.c.bf16 %v793_v43, %v788_v42  ;;  %v585_v50 = vld [vmem:[%s1017_s2 + $0x8] sm:$0xff]  }
  0x1a   :  { %v80_v48 = vpack.c.bf16 %v805_v46, %v800_v45  ;;  %v584_v49 = vld [vmem:[%s1017_s2] sm:$0xff]  }
  0x1b   :  { %108 = vmatpush1.bf16.msra.mxu0 %v66_v35 }
  0x1c   :  { %161 = vmatpush1.bf16.msra.mxu1 %v78_v39  ;;  %109 = vmatprep.subr.bf16.mxu0 %v69_v40 }
  0x1d   :  { %162 = vmatprep.subr.bf16.mxu1 %v81_v44 }
  0x1f   :  { %110 = vmatpush1.bf16.msra.mxu0 %v68_v47 }
  0x20   :  { %163 = vmatpush1.bf16.msra.mxu1 %v80_v48 }
  0x22   :  { %566 = vmatmul.mubr.msk.bf16.vlgmr.msra.gmra.mrb[0].mxu0 %vm96_vm0, %v584_v49 }
  0x23   :  { %568 = vmatmul.mubr.msk.bf16.vlgmr.msra.gmra.mrb[0].mxu1 %vm96_vm0, %v584_v49  ;;  %145 = vmatprep.mubr.bf16.mxu0 %v627_v7 }
  0x24   :  { %198 = vmatprep.mubr.bf16.mxu1 %v627_v7 }
  0x2a   :  { %567 = vmatmul.mubr.msk.bf16.gmra.mrb[4].mxu0 %vm96_vm0, %v585_v50 }
  0x2b   :  { %569 = vmatmul.mubr.msk.bf16.gmra.mrb[4].mxu1 %vm96_vm0, %v585_v50 }
  0xf5   :  { %v819_v51 = vpop.f32.mrb[0].mxu0 }
  0xf6   :  { %v238_v52 = vmul.f32 %v819_v51, %v819_v51  ;;  %v823_v53 = vpop.f32.mrb[0].mxu1  ;;  %v825_v54 = vpop.f32.mrb[1].mxu0 }
  0xf7   :  { %v213_v55 = vadd.f32 %v825_v54, %v819_v51  ;;  %v239_v56 = vmul.f32 %v825_v54, %v825_v54  ;;  %v831_v57 = vpop.f32.mrb[1].mxu1  ;;  %v833_v58 = vpop.f32.mrb[2].mxu0  ;;  %v240_v59 = vmul.f32 %v823_v53, %v823_v53 }
  0xf8   :  { %v242_v60 = vmul.f32 %v833_v58, %v833_v58  ;;  %v839_v61 = vpop.f32.mrb[2].mxu1  ;;  %v841_v62 = vpop.f32.mrb[3].mxu0  ;;  %v241_v8 = vmul.f32 %v831_v57, %v831_v57 }
  0xf9   :  { %v218_v63 = vadd.f32 %v841_v62, %v833_v58  ;;  %v243_v0 = vmul.f32 %v841_v62, %v841_v62  ;;  %v847_v1 = vpop.f32.mrb[3].mxu1  ;;  %v214_v2 = vadd.f32 %v213_v55, %v823_v53  ;;  %v254_v3 = vadd.f32 %v239_v56, %v238_v52 }
  0xfa   :  { %v244_v4 = vmul.f32 %v839_v61, %v839_v61  ;;  %v245_v11 = vmul.f32 %v847_v1, %v847_v1 }
  0xfb   :  { %v215_v5 = vadd.f32 %v214_v2, %v831_v57  ;;  %v259_v6 = vadd.f32 %v243_v0, %v242_v60  ;;  %v219_v7 = vadd.f32 %v218_v63, %v839_v61  ;;  %v255_v9 = vadd.f32 %v254_v3, %v240_v59  ;;  %v210_v3 = vld [vmem:[%s1018_s3 + $0x8] sm:$0xff] }
  0xfd   :  { %216 = vadd.xlane.f32.xlu0 %v215_v5  ;;  %v856_v10 = vpop.f32.mrb[4].mxu0  ;;  %v260_v12 = vadd.f32 %v259_v6, %v244_v4  ;;  %v220_v13 = vadd.f32 %v219_v7, %v847_v1  ;;  %v256_v17 = vadd.f32 %v255_v9, %v241_v8  ;;  %v211_v4 = vld [vmem:[%s1018_s3 + $0x10] sm:$0xff]  ;;  %v209_v5 = vld [vmem:[%s1018_s3] sm:$0xff]  ;;  %v212_v6 = vld [vmem:[%s1018_s3 + $0x18] sm:$0xff]  ;;  %v628_v7 = vmov 2   ;;  %s454_s3 = sld [smem:[#allocation2]] }
  0xfe   :  { %v861_v14 = vpop.f32.mrb[4].mxu1  ;;  %v246_v15 = vmul.f32 %v856_v10, %v856_v10  ;;  %v865_v16 = vpop.f32.mrb[5].mxu0  ;;  %v629_v8 = vmov 1  }
  0xff   :  { %v223_v18 = vadd.f32 %v865_v16, %v856_v10  ;;  %v247_v19 = vmul.f32 %v865_v16, %v865_v16  ;;  %v871_v20 = vpop.f32.mrb[5].mxu1  ;;  %v873_v21 = vpop.f32.mrb[6].mxu0  ;;  %v261_v22 = vadd.f32 %v260_v12, %v245_v11  ;;  %v248_v23 = vmul.f32 %v861_v14, %v861_v14 }
 0x100   :  { %v250_v26 = vmul.f32 %v873_v21, %v873_v21  ;;  %v879_v27 = vpop.f32.mrb[6].mxu1  ;;  %v881_v31 = vpop.f32.mrb[7].mxu0  ;;  %v249_v55 = vmul.f32 %v871_v20, %v871_v20 }
 0x101   :  { %v228_v35 = vadd.f32 %v881_v31, %v873_v21  ;;  %v251_v39 = vmul.f32 %v881_v31, %v881_v31  ;;  %v887_v40 = vpop.f32.mrb[7].mxu1  ;;  %262 = vadd.xlane.f32.xlu1 %v261_v22  ;;  %221 = vadd.xlane.f32.xlu0 %v220_v13  ;;  %v224_v44 = vadd.f32 %v223_v18, %v861_v14 }
 0x102   :  { %v264_v47 = vadd.f32 %v247_v19, %v246_v15  ;;  %v252_v48 = vmul.f32 %v879_v27, %v879_v27  ;;  %v253_v59 = vmul.f32 %v887_v40, %v887_v40 }
 0x103   :  { %v269_v49 = vadd.f32 %v251_v39, %v250_v26  ;;  %v229_v50 = vadd.f32 %v228_v35, %v879_v27  ;;  %v225_v52 = vadd.f32 %v224_v44, %v871_v20 }
 0x104   :  { %v265_v56 = vadd.f32 %v264_v47, %v248_v23 }
 0x105   :  { %257 = vadd.xlane.f32.xlu0 %v256_v17  ;;  %v230_v60 = vadd.f32 %v229_v50, %v887_v40  ;;  %v270_v63 = vadd.f32 %v269_v49, %v252_v48  ;;  %226 = vadd.xlane.f32.xlu1 %v225_v52 }
 0x106   :  { %v266_v0 = vadd.f32 %v265_v56, %v249_v55 }
 0x107   :  { %v271_v2 = vadd.f32 %v270_v63, %v253_v59 }
 0x109   :  { %267 = vadd.xlane.f32.xlu0 %v266_v0  ;;  %231 = vadd.xlane.f32.xlu1 %v230_v60 }
 0x11a   :  { %313 = vperm.xlu1 %580, %v210_v3  }
 0x11e   :  { %318 = vperm.xlu1 %580, %v211_v4  }
 0x11f   :  { %308 = vperm.xlu0 %579, %v209_v5  }
 0x122   :  { %323 = vperm.xlu1 %580, %v212_v6  }
 0x123   :  { %583 = vset.pattern.permute.xlu0 %v628_v7 }
 0x124   :  { %415 = vperm.xlu0 %583, %v210_v3  }
 0x126   :  { %581 = vset.pattern.permute.xlu1 %v629_v8 }
 0x127   :  { %367 = vperm.xlu1 %581, %v209_v5  }
 0x12b   :  { %371 = vperm.xlu1 %581, %v210_v3  }
 0x12f   :  { %375 = vperm.xlu1 %581, %v211_v4  }
 0x133   :  { %379 = vperm.xlu1 %581, %v212_v6  }
 0x137   :  { %582 = vset.pattern.permute.xlu1 %v628_v7 }
 0x157   :  { %272 = vadd.xlane.f32.xlu1 %v271_v2 }
 0x168   :  { %410 = vperm.xlu1 %582, %v209_v5  }
 0x18a   :  { %v217_v9 = vpop.xlane.xlu0 %216 }
 0x18b   :  { %v234_v13 = vmul.f32 0.001953125, %v217_v9 }
 0x18d   :  { %v278_v17 = vmul.f32 %v234_v13, %v234_v13  ;;  %v290_v63 = vsub.f32 %v819_v51, %v234_v13  ;;  %v291_v0 = vsub.f32 %v825_v54, %v234_v13  ;;  %v292_v2 = vsub.f32 %v823_v53, %v234_v13 }
 0x18e   :  { %v911_v11 = vpop.xlane.xlu1 %262  ;;  %v913_v12 = vpop.xlane.xlu0 %221  ;;  %v293_v3 = vsub.f32 %v831_v57, %v234_v13 }
 0x192   :  { %v258_v15 = vpop.xlane.xlu0 %257  ;;  %v227_v19 = vpop.xlane.xlu1 %226 }
 0x193   :  { %v274_v18 = vmul.f32 0.001953125, %v258_v15  ;;  %v236_v22 = vmul.f32 0.001953125, %v227_v19 }
 0x195   :  { %v282_v23 = vsub.f32 %v274_v18, %v278_v17  ;;  %v280_v44 = vmul.f32 %v236_v22, %v236_v22  ;;  %v298_v15 = vsub.f32 %v856_v10, %v236_v22  ;;  %v299_v17 = vsub.f32 %v865_v16, %v236_v22 }
 0x196   :  { %v268_v26 = vpop.xlane.xlu0 %267  ;;  %v232_v47 = vpop.xlane.xlu1 %231  ;;  %v300_v18 = vsub.f32 %v861_v14, %v236_v22  ;;  %v301_v51 = vsub.f32 %v871_v20, %v236_v22 }
 0x197   :  { %v286_v35 = vmax.f32 %v282_v23, 0.0  ;;  %v276_v39 = vmul.f32 0.001953125, %v268_v26 }
 0x199   :  { %v284_v48 = vsub.f32 %v276_v39, %v280_v44  ;;  %v342_v49 = vadd.f32 1e-05, %v286_v35 }
 0x19a   :  { %v915_v52 = vpop.permute.xlu1 %313 }
 0x19b   :  { %v288_v50 = vmax.f32 %v284_v48, 0.0  ;;  %586 = vrsqrt.f32 %v342_v49 }
 0x19d   :  { %v344_v55 = vadd.f32 1e-05, %v288_v50 }
 0x19e   :  { %v319_v56 = vpop.permute.xlu1 %318  ;;  %v309_v60 = vpop.permute.xlu0 %308 }
 0x19f   :  { %588 = vrsqrt.f32 %v344_v55  ;;  %v326_v6 = vmul.f32 %v309_v60, %v290_v63  ;;  %v327_v7 = vmul.f32 %v309_v60, %v291_v0  ;;  %v328_v8 = vmul.f32 %v309_v60, %v292_v2 }
 0x1a0   :  { %v329_v9 = vmul.f32 %v309_v60, %v293_v3  ;;  %v334_v13 = vmul.f32 %v319_v56, %v298_v15  ;;  %v335_v35 = vmul.f32 %v319_v56, %v299_v17  ;;  %v336_v39 = vmul.f32 %v319_v56, %v300_v18 }
 0x1a1   :  { %v337_v44 = vmul.f32 %v319_v56, %v301_v51  ;;  %v237_v18 = vmul.f32 0.001953125, %v232_v47 }
 0x1a2   :  { %v917_v59 = vpop.permute.xlu1 %323 }
 0x1a3   :  { %v302_v47 = vsub.f32 %v873_v21, %v237_v18 }
 0x1a5   :  { %v587_v5 = vpop.eup %586 }
 0x1a6   :  { %v368_v4 = vpop.permute.xlu1 %367  ;;  %v350_v54 = vmul.f32 %v587_v5, %v326_v6  ;;  %v351_v23 = vmul.f32 %v587_v5, %v327_v7  ;;  %v352_v53 = vmul.f32 %v587_v5, %v328_v8  ;;  %v353_v26 = vmul.f32 %v587_v5, %v329_v9 }
 0x1a7   :  { %v235_v8 = vmul.f32 0.001953125, %v913_v12  ;;  %v275_v9 = vmul.f32 0.001953125, %v911_v11 }
 0x1a8   :  { %v382_v16 = vadd.f32 %v368_v4, %v350_v54  ;;  %v383_v55 = vadd.f32 %v368_v4, %v351_v23  ;;  %v384_v14 = vadd.f32 %v368_v4, %v352_v53  ;;  %v385_v60 = vadd.f32 %v368_v4, %v353_v26 }
 0x1a9   :  { %v589_v19 = vpop.eup %588  ;;  %v279_v56 = vmul.f32 %v235_v8, %v235_v8  ;;  %v281_v4 = vmul.f32 %v237_v18, %v237_v18  ;;  %v295_v12 = vsub.f32 %v841_v62, %v235_v8  ;;  %v297_v11 = vsub.f32 %v847_v1, %v235_v8 }
 0x1aa   :  { %v927_v57 = vpop.permute.xlu1 %371  ;;  %v358_v48 = vmul.f32 %v589_v19, %v334_v13  ;;  %v359_v49 = vmul.f32 %v589_v19, %v335_v35  ;;  %v360_v10 = vmul.f32 %v589_v19, %v336_v39  ;;  %v361_v50 = vmul.f32 %v589_v19, %v337_v44 }
 0x1ab   :  { %v283_v15 = vsub.f32 %v275_v9, %v279_v56  ;;  %v294_v35 = vsub.f32 %v833_v58, %v235_v8  ;;  %v296_v39 = vsub.f32 %v839_v61, %v235_v8  ;;  %v333_v62 = vmul.f32 %v915_v52, %v297_v11 }
 0x1ac   :  { %v338_v61 = vmul.f32 %v917_v59, %v302_v47 }
 0x1ad   :  { %v287_v51 = vmax.f32 %v283_v15, 0.0  ;;  %v332_v58 = vmul.f32 %v915_v52, %v296_v39 }
 0x1ae   :  { %v376_v20 = vpop.permute.xlu1 %375 }
 0x1af   :  { %v390_v22 = vadd.f32 %v376_v20, %v358_v48  ;;  %v391_v63 = vadd.f32 %v376_v20, %v359_v49  ;;  %v392_v0 = vadd.f32 %v376_v20, %v360_v10  ;;  %v393_v2 = vadd.f32 %v376_v20, %v361_v50 }
 0x1b0   :  { %v343_v23 = vadd.f32 1e-05, %v287_v51  ;;  %v303_v48 = vsub.f32 %v881_v31, %v237_v18  ;;  %v304_v49 = vsub.f32 %v879_v27, %v237_v18  ;;  %v305_v10 = vsub.f32 %v887_v40, %v237_v18 }
 0x1b1   :  { %v398_v3 = vadd.f32 %v390_v22, %v382_v16  ;;  %v399_v5 = vadd.f32 %v391_v63, %v383_v55  ;;  %v400_v6 = vadd.f32 %v392_v0, %v384_v14  ;;  %v401_v7 = vadd.f32 %v393_v2, %v385_v60 }
 0x1b2   :  { %v380_v17 = vpop.permute.xlu1 %379  ;;  %590 = vrsqrt.f32 %v343_v23  ;;  %v330_v50 = vmul.f32 %v915_v52, %v294_v35  ;;  %v331_v16 = vmul.f32 %v915_v52, %v295_v12  ;;  %v339_v1 = vmul.f32 %v917_v59, %v303_v48 }
 0x1b3   :  { %v340_v21 = vmul.f32 %v917_v59, %v304_v49  ;;  %v341_v31 = vmul.f32 %v917_v59, %v305_v10 }
 0x1bc   :  { %v591_v44 = vpop.eup %590 }
 0x1bd   :  { %v354_v27 = vmul.f32 %v591_v44, %v330_v50  ;;  %v355_v14 = vmul.f32 %v591_v44, %v331_v16  ;;  %v356_v40 = vmul.f32 %v591_v44, %v332_v58  ;;  %v357_v60 = vmul.f32 %v591_v44, %v333_v62 }
 0x1bf   :  { %v386_v2 = vadd.f32 %v927_v57, %v354_v27  ;;  %v387_v52 = vadd.f32 %v927_v57, %v355_v14  ;;  %v388_v8 = vadd.f32 %v927_v57, %v356_v40  ;;  %v389_v56 = vadd.f32 %v927_v57, %v357_v60 }
 0x1e4   :  { %v273_v19 = vpop.xlane.xlu1 %272 }
 0x1e5   :  { %v277_v54 = vmul.f32 0.001953125, %v273_v19  ;;  %v416_v19 = vpop.permute.xlu0 %415 }
 0x1e7   :  { %v285_v53 = vsub.f32 %v277_v54, %v281_v4 }
 0x1e8   :  { %v411_v9 = vpop.permute.xlu1 %410 }
 0x1e9   :  { %v289_v26 = vmax.f32 %v285_v53, 0.0  ;;  %v420_v35 = vmul.f32 %v411_v9, %v400_v6  ;;  %v421_v12 = vmul.f32 %v411_v9, %v401_v7 }
 0x1eb   :  { %v345_v13 = vadd.f32 1e-05, %v289_v26  ;;  %v418_v26 = vmul.f32 %v411_v9, %v398_v3 }
 0x1ed   :  { %592 = vrsqrt.f32 %v345_v13  ;;  %v419_v13 = vmul.f32 %v411_v9, %v399_v5 }
 0x1f7   :  { %v593_v55 = vpop.eup %592 }
 0x1f8   :  { %v362_v20 = vmul.f32 %v593_v55, %v338_v61  ;;  %v363_v22 = vmul.f32 %v593_v55, %v339_v1  ;;  %v364_v63 = vmul.f32 %v593_v55, %v340_v21  ;;  %v365_v0 = vmul.f32 %v593_v55, %v341_v31 }
 0x1fa   :  { %v394_v15 = vadd.f32 %v380_v17, %v362_v20  ;;  %v395_v59 = vadd.f32 %v380_v17, %v363_v22  ;;  %v396_v18 = vadd.f32 %v380_v17, %v364_v63  ;;  %v397_v51 = vadd.f32 %v380_v17, %v365_v0 }
 0x1fc   :  { %v402_v4 = vadd.f32 %v394_v15, %v386_v2  ;;  %v403_v54 = vadd.f32 %v395_v59, %v387_v52  ;;  %v404_v23 = vadd.f32 %v396_v18, %v388_v8  ;;  %v405_v53 = vadd.f32 %v397_v51, %v389_v56 }
 0x1fe   :  { %v422_v39 = vmul.f32 %v416_v19, %v402_v4  ;;  %v423_v11 = vmul.f32 %v416_v19, %v403_v54  ;;  %v424_v44 = vmul.f32 %v416_v19, %v404_v23  ;;  %v425_v47 = vmul.f32 %v416_v19, %v405_v53 }
 0x200   :  { %v426_v48 = vadd.f32 %v422_v39, %v418_v26  ;;  %v433_v57 = vadd.f32 %v423_v11, %v419_v13  ;;  %v440_v49 = vadd.f32 %v424_v44, %v420_v35  ;;  %v447_v10 = vadd.f32 %v425_v47, %v421_v12 }
 0x202   :  { %v427_v50 = vrot.slane %v426_v48, 4  ;;  %v434_v16 = vrot.slane %v433_v57, 4  ;;  %v441_v17 = vrot.slane %v440_v49, 4  ;;  %v448_v58 = vrot.slane %v447_v10, 4 }
 0x204   :  { %v428_v62 = vadd.f32 %v427_v50, %v426_v48  ;;  %v435_v61 = vadd.f32 %v434_v16, %v433_v57  ;;  %v442_v1 = vadd.f32 %v441_v17, %v440_v49  ;;  %v449_v21 = vadd.f32 %v448_v58, %v447_v10 }
 0x205   :  { %v479_v49 = vstv %s454_s3 }
 0x206   :  { %v429_v3 = vrot.slane %v428_v62, 2  ;;  %v436_v5 = vrot.slane %v435_v61, 2  ;;  %v443_v6 = vrot.slane %v442_v1, 2  ;;  %v450_v7 = vrot.slane %v449_v21, 2 }
 0x208   :  { %v430_v31 = vadd.f32 %v429_v3, %v428_v62  ;;  %v437_v55 = vadd.f32 %v436_v5, %v435_v61  ;;  %v444_v27 = vadd.f32 %v443_v6, %v442_v1  ;;  %v451_v14 = vadd.f32 %v450_v7, %v449_v21 }
 0x209   :  { %v490_v62 = vstv %s570_s17 }
 0x20a   :  { %v431_v40 = vrot.slane %v430_v31, 1  ;;  %v438_v60 = vrot.slane %v437_v55, 1  ;;  %v445_v20 = vrot.slane %v444_v27, 1  ;;  %v452_v22 = vrot.slane %v451_v14, 1 }
 0x20c   :  { %v432_v63 = vadd.f32 %v431_v40, %v430_v31  ;;  %v439_v0 = vadd.f32 %v438_v60, %v437_v55  ;;  %v446_v2 = vadd.f32 %v445_v20, %v444_v27  ;;  %v453_v52 = vadd.f32 %v452_v22, %v451_v14 }
 0x20e   :  { %v456_v8 = vadd.f32 %v439_v0, %v432_v63  ;;  %v462_v56 = vmul.f32 %v432_v63, %v432_v63  ;;  %v463_v9 = vmul.f32 %v439_v0, %v439_v0  ;;  %v464_v59 = vmul.f32 %v446_v2, %v446_v2 }
 0x20f   :  { %v465_v19 = vmul.f32 %v453_v52, %v453_v52 }
 0x210   :  { %v457_v15 = vadd.f32 %v456_v8, %v446_v2  ;;  %v466_v18 = vadd.f32 %v463_v9, %v462_v56 }
 0x212   :  { %v458_v51 = vadd.f32 %v457_v15, %v453_v52  ;;  %v467_v4 = vadd.f32 %v466_v18, %v464_v59 }
 0x214   :  { %459 = vadd.xlane.f32.xlu1 %v458_v51  ;;  %v468_v54 = vadd.f32 %v467_v4, %v465_v19 }
 0x216   :  { %469 = vadd.xlane.f32.xlu0 %v468_v54 }
 0x2a1   :  { %v460_v23 = vpop.xlane.xlu1 %459 }
 0x2a2   :  { %v461_v53 = vmul.f32 0.001953125, %v460_v23 }
 0x2a3   :  { %v470_v26 = vpop.xlane.xlu0 %469 }
 0x2a4   :  { %v471_v13 = vmul.f32 0.001953125, %v470_v26  ;;  %v472_v35 = vmul.f32 %v461_v53, %v461_v53  ;;  %v475_v44 = vsub.f32 %v432_v63, %v461_v53  ;;  %v476_v47 = vsub.f32 %v439_v0, %v461_v53 }
 0x2a5   :  { %v477_v48 = vsub.f32 %v446_v2, %v461_v53  ;;  %v478_v57 = vsub.f32 %v453_v52, %v461_v53 }
 0x2a6   :  { %v473_v12 = vsub.f32 %v471_v13, %v472_v35  ;;  %v480_v10 = vmul.f32 %v479_v49, %v475_v44  ;;  %v481_v50 = vmul.f32 %v479_v49, %v476_v47 }
 0x2a7   :  { %v482_v16 = vmul.f32 %v479_v49, %v477_v48  ;;  %v483_v17 = vmul.f32 %v479_v49, %v478_v57 }
 0x2a8   :  { %v474_v39 = vmax.f32 %v473_v12, 0.0 }
 0x2aa   :  { %v484_v11 = vadd.f32 1e-05, %v474_v39 }
 0x2ac   :  { %594 = vrsqrt.f32 %v484_v11 }
 0x2b6   :  { %v595_v58 = vpop.eup %594 }
 0x2b7   :  { %v486_v61 = vmul.f32 %v595_v58, %v480_v10  ;;  %v487_v1 = vmul.f32 %v595_v58, %v481_v50  ;;  %v488_v21 = vmul.f32 %v595_v58, %v482_v16  ;;  %v489_v3 = vmul.f32 %v595_v58, %v483_v17 }
 0x2b9   :  { %v491_v5 = vadd.f32 %v490_v62, %v486_v61  ;;  %v492_v6 = vadd.f32 %v490_v62, %v487_v1  ;;  %v493_v7 = vadd.f32 %v490_v62, %v488_v21  ;;  %v494_v31 = vadd.f32 %v490_v62, %v489_v3 }
 0x2bb   :  { %v571_v55 = vmul.f32 -1.442695, %v491_v5  ;;  %v572_v27 = vmul.f32 -1.442695, %v492_v6  ;;  %v573_v14 = vmul.f32 -1.442695, %v493_v7 }
 0x2bc   :  { %v574_v40 = vmul.f32 -1.442695, %v494_v31 }
 0x2bd   :  { %596 = vpow2.f32 %v571_v55 }
 0x2be   :  { %598 = vpow2.f32 %v572_v27 }
 0x2bf   :  { %600 = vpow2.f32 %v573_v14 }
 0x2c0   :  { %602 = vpow2.f32 %v574_v40 }
 0x2c7   :  { %v597_v60 = vpop.eup %596 }
 0x2c8   :  { %v599_v20 = vpop.eup %598  ;;  %v507_v22 = vadd.f32 1.0, %v597_v60 }
 0x2c9   :  { %v601_v63 = vpop.eup %600  ;;  %v508_v0 = vadd.f32 1.0, %v599_v20 }
 0x2ca   :  { %v603_v2 = vpop.eup %602  ;;  %v509_v52 = vadd.f32 1.0, %v601_v63  ;;  %604 = vrcp.f32 %v507_v22 }
 0x2cb   :  { %v510_v8 = vadd.f32 1.0, %v603_v2  ;;  %606 = vrcp.f32 %v508_v0 }
 0x2cc   :  { %608 = vrcp.f32 %v509_v52 }
 0x2cd   :  { %610 = vrcp.f32 %v510_v8 }
 0x2d4   :  { %v605_v56 = vpop.eup %604 }
 0x2d5   :  { %v607_v9 = vpop.eup %606  ;;  %v519_v15 = vmul.f32 %v605_v56, %v740_v30  ;;  %v521_v59 = vmul.f32 %v605_v56, %v747_v32  ;;  %v523_v18 = vmul.f32 %v605_v56, %v788_v42  ;;  %v525_v51 = vmul.f32 %v605_v56, %v793_v43 }
 0x2d6   :  { %v609_v19 = vpop.eup %608  ;;  %v520_v4 = vmul.f32 %v607_v9, %v718_v24  ;;  %v522_v54 = vmul.f32 %v607_v9, %v723_v25  ;;  %v524_v23 = vmul.f32 %v607_v9, %v764_v36  ;;  %v526_v53 = vmul.f32 %v607_v9, %v769_v37 }
 0x2d7   :  { %v611_v26 = vpop.eup %610  ;;  %527 = vst [vmem:[%s1020_s5] sm:$0xff] %v519_v15  ;;  %529 = vst [vmem:[%s1020_s5 + $0x10] sm:$0xff] %v521_v59  ;;  %v543_v24 = vmul.f32 %v609_v19, %v752_v33  ;;  %v545_v25 = vmul.f32 %v609_v19, %v757_v34  ;;  %v547_v30 = vmul.f32 %v609_v19, %v800_v45 }
 0x2d8   :  { %531 = vst [vmem:[%s1020_s5 + $0x20] sm:$0xff] %v523_v18  ;;  %533 = vst [vmem:[%s1020_s5 + $0x30] sm:$0xff] %v525_v51  ;;  %v549_v32 = vmul.f32 %v609_v19, %v805_v46  ;;  %v544_v33 = vmul.f32 %v611_v26, %v730_v28  ;;  %v546_v34 = vmul.f32 %v611_v26, %v735_v29 }
 0x2d9   :  { %528 = vst [vmem:[%s1020_s5 + $0x8] sm:$0xff] %v520_v4  ;;  %530 = vst [vmem:[%s1020_s5 + $0x18] sm:$0xff] %v522_v54  ;;  %v548_v36 = vmul.f32 %v611_v26, %v774_v38  ;;  %v550_v37 = vmul.f32 %v611_v26, %v783_v41 }
 0x2da   :  { %532 = vst [vmem:[%s1020_s5 + $0x28] sm:$0xff] %v524_v23  ;;  %534 = vst [vmem:[%s1020_s5 + $0x38] sm:$0xff] %v526_v53 }
 0x2db   :  { %551 = vst [vmem:[%s1020_s5 + $0x40] sm:$0xff] %v543_v24  ;;  %553 = vst [vmem:[%s1020_s5 + $0x50] sm:$0xff] %v545_v25 }
 0x2dc   :  { %555 = vst [vmem:[%s1020_s5 + $0x60] sm:$0xff] %v547_v30  ;;  %557 = vst [vmem:[%s1020_s5 + $0x70] sm:$0xff] %v549_v32 }
 0x2dd   :  { %552 = vst [vmem:[%s1020_s5 + $0x48] sm:$0xff] %v544_v33  ;;  %554 = vst [vmem:[%s1020_s5 + $0x58] sm:$0xff] %v546_v34 }
 0x2de   :  { %556 = vst [vmem:[%s1020_s5 + $0x68] sm:$0xff] %v548_v36  ;;  %558 = vst [vmem:[%s1020_s5 + $0x78] sm:$0xff] %v550_v37 }
 0x2df   :  { %563 = vsyncpa [#allocation3], 1 }

</bundles_post_ra>
